<compile_context>
chip_gen: v6e
topology: v6e:2x2x1
jax: 0.10.0
libtpu: 0.0.40
codegen_flags: <defaults>
</compile_context>

<pallas_src>
import math

import jax
import jax.numpy as jnp
from jax.experimental import pallas as pl
from jax.experimental.pallas import tpu as pltpu


def _round_up(x, m):
    return (x + m - 1) // m * m


def _plan_axis(extent, target_block, *, tile=128):
    """Tight tiling of one axis: returns (block, num_blocks, padded_extent).

    If extent <= tile the axis is a single full-extent block (no padding).
    Otherwise blocks are multiples of `tile` and padding is at most `tile`
    per block (never rounds the whole axis up to `target_block`)."""
    extent = int(extent)
    if extent <= tile:
        return extent, 1, extent
    ext_r = _round_up(extent, tile)
    target = max(tile, (int(target_block) // tile) * tile)
    num = pl.cdiv(ext_r, target)
    block = _round_up(pl.cdiv(ext_r, num), tile)
    return block, num, num * block


# ------------------------------------------------------------------ kernel ---
def _linear_kernel(x_ref, w_ref, b_ref, o_ref):
    """grid = (n_tiles, num_k); j tiles output features (parallel), k is the
    reduction over input features (arbitrary, innermost).

    x_ref: (B, block_k)        bf16  activation tile
    w_ref: (block_k, block_n)  bf16  weight tile (N lane-dense, no transpose)
    b_ref: (1, block_n)        f32   bias tile
    o_ref: (B, block_n)        f32   output tile; its index_map is constant
                                     over k, so it stays VMEM-resident across
                                     the reduction and doubles as the f32
                                     accumulator (no scratch needed).
    """
    k = pl.program_id(1)

    @pl.when(k == 0)
    def _init():
        o_ref[...] = jnp.zeros_like(o_ref)

    # bf16 x bf16 on the MXU, f32 accumulation.
    o_ref[...] += jnp.dot(x_ref[...], w_ref[...],
                          preferred_element_type=jnp.float32)

    @pl.when(k == pl.num_programs(1) - 1)
    def _finalize():
        o_ref[...] += b_ref[...]


# ----------------------------------------------------------------- wrapper ---
def pallas_linear(x, w, b, *, block_k, block_n):
    """out = x @ w + b with pre-padded, pre-cast operands.

    x: (B, K_pad) bf16;  w: (K_pad, N_pad) bf16;  b: (1, N_pad) f32.
    Returns (B, N_pad) f32.
    """
    B, K_pad = x.shape
    Kw, N_pad = w.shape
    assert K_pad == Kw, (K_pad, Kw)
    assert K_pad % block_k == 0 and N_pad % block_n == 0, (K_pad, block_k, N_pad, block_n)
    num_k = K_pad // block_k
    n_tiles = N_pad // block_n

    x_spec = pl.BlockSpec((B, block_k), lambda j, k: (0, k))
    w_spec = pl.BlockSpec((block_k, block_n), lambda j, k: (k, j))
    b_spec = pl.BlockSpec((1, block_n), lambda j, k: (0, j))
    o_spec = pl.BlockSpec((B, block_n), lambda j, k: (0, j))

    w_isz = jnp.dtype(w.dtype).itemsize
    x_isz = jnp.dtype(x.dtype).itemsize
    # double-buffered working set + headroom; cap below v7x's 64 MiB physical
    needed = (2 * block_k * block_n * w_isz      # weight buffers (default 2-deep)
              + 2 * B * block_k * x_isz          # activation buffers
              + 2 * block_n * 4                  # bias buffers
              + 2 * B * block_n * 4)             # resident output block
    vmem_limit = int(min(56 << 20, max(32 << 20, needed + (8 << 20))))

    cost = pl.CostEstimate(
        flops=2 * B * N_pad * K_pad,
        transcendentals=0,
        bytes_accessed=(K_pad * N_pad * w_isz          # weight stream
                        + n_tiles * B * K_pad * x_isz  # x re-read per N tile
                        + B * N_pad * 4 + N_pad * 4))

    return pl.pallas_call(
        _linear_kernel,
        out_shape=jax.ShapeDtypeStruct((B, N_pad), jnp.float32),
        grid_spec=pltpu.PrefetchScalarGridSpec(
            num_scalar_prefetch=0,
            grid=(n_tiles, num_k),                 # K reduction innermost
            in_specs=[x_spec, w_spec, b_spec],
            out_specs=o_spec),
        compiler_params=pltpu.CompilerParams(
            dimension_semantics=("parallel", "arbitrary"),
            vmem_limit_bytes=vmem_limit),
        cost_estimate=cost,
    )(x, w, b)


# ----------------------------------------------------------------- encoder ---
def encoder_apply(seq_x, w_emb, b_emb):
    """Deterministic linear per-channel value embedding standing in for the
    external `encoder`: enc[b,l,c,:] = seq_x[b,l,c]*w_emb[c,:] + b_emb[c,:].
    stop_gradient mirrors `with torch.no_grad():`.  Kept only as the reference
    path; the model folds this linear map into the Linear weights."""
    enc = seq_x[..., None] * w_emb[None, None, :, :] + b_emb[None, None, :, :]
    return jax.lax.stop_gradient(enc)  # (B, L, C, d_model)


# ------------------------------------------------------------------- model ---
class ForecastingModelPallas:
    def __init__(self, key, seq_len, pred_len, d_model, num_channels,
                 *, weight_dtype=jnp.bfloat16, block_k=None, block_n=None):
        self.seq_len = seq_len
        self.pred_len = pred_len
        self.d_model = d_model
        self.num_channels = num_channels

        in_features = seq_len * d_model * num_channels
        out_features = pred_len * num_channels
        self.K = seq_len * num_channels          # folded in-features
        self.N = out_features

        k_w, k_b, k_we, k_be = jax.random.split(key, 4)
        bound = 1.0 / math.sqrt(in_features)
        # torch nn.Linear layout: weight (out_features, in_features), bias (out,)
        self.w_lin = jax.random.uniform(
            k_w, (out_features, in_features), jnp.float32, -bound, bound)
        self.b_lin = jax.random.uniform(
            k_b, (out_features,), jnp.float32, -bound, bound)
        # synthetic frozen linear "encoder" params (per-channel value embedding)
        self.w_emb = jax.random.normal(k_we, (num_channels, d_model), jnp.float32) * 0.1
        self.b_emb = jax.random.normal(k_be, (num_channels, d_model), jnp.float32) * 0.1

        # ---- fold the frozen linear encoder into the Linear (exact math) ----
        # enc[b,l,c,d] = seq_x[b,l,c]*w_emb[c,d] + b_emb[c,d]; flattening maps
        # (l,c,d) -> (l*C+c)*D + d, so the composed op is seq_x.reshape(B, L*C)
        # @ W'^T + b'  ->  d_model x fewer streamed bytes / FLOPs.
        # TODO(synk): a real (non-linear) encoder cannot be folded; run it as a
        # jitted JAX sub-network and feed its flattened output to pallas_linear.
        w4 = self.w_lin.reshape(out_features, seq_len, num_channels, d_model)
        w_folded = jnp.einsum("nlcd,cd->nlc", w4, self.w_emb)
        w_folded = w_folded.reshape(self.N, self.K)
        b_folded = self.b_lin + jnp.einsum("nlcd,cd->n", w4, self.b_emb)

        # ---- tiling plan (computed once) -------------------------------------
        w_isz = jnp.dtype(weight_dtype).itemsize
        if block_n is None:
            # single lane-dense tile for small/medium N; ~1024-wide tiles above
            # that (gives v7x a parallel axis on the grid).
            bn_target = _round_up(self.N, 128) if self.N <= 2048 else 1024
        else:
            bn_target = block_n
        self.block_n, self.n_tiles, self.N_pad = _plan_axis(self.N, bn_target)

        if block_k is None:
            w_tile_budget = 8 << 20                  # bytes per weight tile
            bk_target = max(128, (w_tile_budget // max(1, self.block_n * w_isz))
                            // 128 * 128)
            bk_target = min(bk_target, 16384)
        else:
            bk_target = block_k
        self.block_k, self.num_k, self.K_pad = _plan_axis(self.K, bk_target)

        # ---- pre-pad / pre-cast weights ONCE (nothing weight-sized in fwd) ---
        w_kn = jnp.transpose(w_folded)               # (K, N) lane-dense in N
        w_kn = jnp.pad(w_kn, ((0, self.K_pad - self.K), (0, self.N_pad - self.N)))
        self.w_kn = w_kn.astype(weight_dtype)        # (K_pad, N_pad) bf16
        b_pad = jnp.pad(b_folded, (0, self.N_pad - self.N))
        self.b_1n = b_pad.astype(jnp.float32).reshape(1, self.N_pad)

        self._forward = jax.jit(self._forward_impl)

    def _forward_impl(self, seq_x):
        # TODO(synk): for very large batch sizes also tile B on the grid to
        # bound activation/output VMEM (B stays full-extent here).
        B = seq_x.shape[0]
        # row-major reshape of (B, L, C) == torch .view on the matching axes
        x = seq_x.reshape(B, self.K)
        if self.K_pad != self.K:
            x = jnp.pad(x, ((0, 0), (0, self.K_pad - self.K)))
        x = x.astype(self.w_kn.dtype)                # cast once, not per K step
        pred = pallas_linear(x, self.w_kn, self.b_1n,
                             block_k=self.block_k, block_n=self.block_n)
        if self.N_pad != self.N:
            pred = pred[:, :self.N]
        return pred.reshape(B, self.pred_len, self.num_channels)

    def __call__(self, seq_x):
        return self._forward(seq_x)


# -------------------------------------------------------------------- main ---
if __name__ == "__main__":
    key = jax.random.PRNGKey(0)
    k_model, k_data = jax.random.split(key)

    # Small demo shapes.  block_k=128 so the demo exercises the multi-step
    # K-reduction / resident-output accumulation path (K = L*C = 512 -> 4
    # grid steps).  For production shapes leave block_k=None and ~8 MiB
    # weight tiles are derived automatically under the VMEM cap.
    B, seq_len, num_channels = 2, 64, 8
    d_model, pred_len = 32, 8

    model = ForecastingModelPallas(k_model, seq_len, pred_len, d_model,
                                   num_channels, block_k=128)
    seq_x = jax.random.normal(k_data, (B, seq_len, num_channels), jnp.float32)

    out = model(seq_x)
    out = jax.block_until_ready(out)
    assert out.shape == (B, pred_len, num_channels), out.shape

    # check 1: kernel vs. plain-JAX reference at identical (bf16 -> f32) precision
    x2 = seq_x.reshape(B, -1)
    if model.K_pad != model.K:
        x2 = jnp.pad(x2, ((0, 0), (0, model.K_pad - model.K)))
    ref_same = jnp.dot(x2.astype(model.w_kn.dtype), model.w_kn,
                       preferred_element_type=jnp.float32) + model.b_1n
    ref_same = ref_same[:, :model.N].reshape(B, pred_len, num_channels)
    assert jnp.allclose(out, ref_same, atol=1e-3, rtol=1e-3), \
        float(jnp.max(jnp.abs(out - ref_same)))

    # check 2: folded path matches the original encoder -> flatten -> Linear
    enc = encoder_apply(seq_x, model.w_emb, model.b_emb)        # (B, L, C, D)
    flat = enc.reshape(B, -1)
    ref_full = (flat @ model.w_lin.T + model.b_lin).reshape(B, pred_len, num_channels)
    assert jnp.allclose(out, ref_full, atol=1e-2, rtol=1e-2), \
        float(jnp.max(jnp.abs(out - ref_full)))

    print("KERNEL_OK")
</pallas_src>

<mosaic_0001>
module attributes {stable_mosaic.version = 11 : i64} {
  func.func @_linear_kernel(%arg0: i32, %arg1: i32, %arg2: memref<2x128xbf16, #tpu.memory_space<vmem>>, %arg3: memref<128x64xbf16, #tpu.memory_space<vmem>>, %arg4: memref<1x64xf32, #tpu.memory_space<vmem>>, %arg5: memref<2x64xf32, #tpu.memory_space<vmem>>) attributes {dimension_semantics = [#tpu.dimension_semantics<parallel>, #tpu.dimension_semantics<arbitrary>], iteration_bounds = array<i64: 1, 4>, scalar_prefetch = 0 : i64, scratch_operands = 0 : i64, tpu.core_type = #tpu.core_type<tc>, window_params = [{transform_indices = @transform_0, window_bounds = array<i64: 2, 128>}, {transform_indices = @transform_1, window_bounds = array<i64: 128, 64>}, {transform_indices = @transform_2, window_bounds = array<i64: 1, 64>}, {transform_indices = @transform_3, window_bounds = array<i64: 2, 64>}]} {
    %c0_i32 = arith.constant 0 : i32
    %0 = arith.cmpi eq, %arg1, %c0_i32 : i32
    %1 = arith.extui %0 : i1 to i32
    %c0_i32_0 = arith.constant 0 : i32
    %2 = arith.cmpi ne, %1, %c0_i32_0 : i32
    scf.if %2 {
      %cst_9 = arith.constant 0.000000e+00 : f32
      %12 = vector.broadcast %cst_9 : f32 to vector<2x64xf32>
      %c0_10 = arith.constant 0 : index
      %c0_11 = arith.constant 0 : index
      %13 = vector.load %arg5[%c0_10, %c0_11] : memref<2x64xf32, #tpu.memory_space<vmem>>, vector<2x64xf32>
      tpu.vector_store %arg5[%c0_10, %c0_11], %12 {strides = array<i32>} : memref<2x64xf32, #tpu.memory_space<vmem>>, vector<2x64xf32>,
    } else {
    }
    %c0 = arith.constant 0 : index
    %c0_1 = arith.constant 0 : index
    %3 = vector.load %arg5[%c0, %c0_1] : memref<2x64xf32, #tpu.memory_space<vmem>>, vector<2x64xf32>
    %c0_2 = arith.constant 0 : index
    %c0_3 = arith.constant 0 : index
    %4 = vector.load %arg2[%c0_2, %c0_3] : memref<2x128xbf16, #tpu.memory_space<vmem>>, vector<2x128xbf16>
    %c0_4 = arith.constant 0 : index
    %c0_5 = arith.constant 0 : index
    %5 = vector.load %arg3[%c0_4, %c0_5] : memref<128x64xbf16, #tpu.memory_space<vmem>>, vector<128x64xbf16>
    %cst = arith.constant dense<0.000000e+00> : vector<2x64xf32>
    %6 = tpu.matmul %4, %5, %cst {dimension_numbers = #tpu.dot_dimension_numbers<[1], [0], [0], [1], [0, 0, 1, 1], [], []>} : vector<2x128xbf16>, vector<128x64xbf16>, vector<2x64xf32> -> vector<2x64xf32>
    %7 = arith.addf %3, %6 : vector<2x64xf32>
    %c0_6 = arith.constant 0 : index
    %c0_7 = arith.constant 0 : index
    %8 = vector.load %arg5[%c0_6, %c0_7] : memref<2x64xf32, #tpu.memory_space<vmem>>, vector<2x64xf32>
    tpu.vector_store %arg5[%c0_6, %c0_7], %7 {strides = array<i32>} : memref<2x64xf32, #tpu.memory_space<vmem>>, vector<2x64xf32>,
    %c3_i32 = arith.constant 3 : i32
    %9 = arith.cmpi eq, %arg1, %c3_i32 : i32
    %10 = arith.extui %9 : i1 to i32
    %c0_i32_8 = arith.constant 0 : i32
    %11 = arith.cmpi ne, %10, %c0_i32_8 : i32
    scf.if %11 {
      %c0_9 = arith.constant 0 : index
      %c0_10 = arith.constant 0 : index
      %12 = vector.load %arg5[%c0_9, %c0_10] : memref<2x64xf32, #tpu.memory_space<vmem>>, vector<2x64xf32>
      %c0_11 = arith.constant 0 : index
      %c0_12 = arith.constant 0 : index
      %13 = vector.load %arg4[%c0_11, %c0_12] : memref<1x64xf32, #tpu.memory_space<vmem>>, vector<1x64xf32>
      %14 = vector.broadcast %13 : vector<1x64xf32> to vector<2x64xf32>
      %15 = arith.addf %12, %14 : vector<2x64xf32>
      %c0_13 = arith.constant 0 : index
      %c0_14 = arith.constant 0 : index
      %16 = vector.load %arg5[%c0_13, %c0_14] : memref<2x64xf32, #tpu.memory_space<vmem>>, vector<2x64xf32>
      tpu.vector_store %arg5[%c0_13, %c0_14], %15 {strides = array<i32>} : memref<2x64xf32, #tpu.memory_space<vmem>>, vector<2x64xf32>,
    } else {
    }
    return
  }
  func.func @transform_0(%arg0: i32, %arg1: i32) -> (i32, i32) {
    %c0_i32 = arith.constant 0 : i32
    %c0_i32_0 = arith.constant 0 : i32
    return %c0_i32, %arg1 : i32, i32
  }
  func.func @transform_1(%arg0: i32, %arg1: i32) -> (i32, i32) {
    %c0_i32 = arith.constant 0 : i32
    return %arg1, %arg0 : i32, i32
  }
  func.func @transform_2(%arg0: i32, %arg1: i32) -> (i32, i32) {
    %c0_i32 = arith.constant 0 : i32
    %c0_i32_0 = arith.constant 0 : i32
    return %c0_i32, %arg0 : i32, i32
  }
  func.func @transform_3(%arg0: i32, %arg1: i32) -> (i32, i32) {
    %c0_i32 = arith.constant 0 : i32
    %c0_i32_0 = arith.constant 0 : i32
    return %c0_i32, %arg0 : i32, i32
  }
}

</mosaic_0001>

<bundles_post_ra>
// kernel: _forward_impl.1
= control target key start
LH: loop header
LB: loop body
LE: loop exit
PB: predicated region body
PF: predicated region fallthrough
CT: control target
= control target key end

     0   :  { %8 = vsyncpa [#allocation3], 0  ;;  %s817_s0 = inlined_call_operand.vmem [shape: bf16[2,512], index: 0, kind: input, shape index: {}]   ;;  %s818_s1 = inlined_call_operand.hbm [shape: bf16[512,64], index: 1, kind: input, shape index: {}]   ;;  %s819_s2 = inlined_call_operand.vmem [shape: f32[1,64], index: 2, kind: input, shape index: {}]   ;;  %s820_s3 = inlined_call_operand.vmem [shape: f32[2,64], index: 3, kind: output, shape index: {}]  }
   0x1   :  { %10 = vsyncpa [#allocation3 + $0x1], 0  ;;  %s683_s12 = smov 0   ;;  %s685_s13 = smov 0  }
   0x2   :  { %s687_s14 = smov 0   ;;  %s689_s15 = smov 0  }
   0x3   :  { %s691_s16 = smov 0   ;;  %s693_s17 = smov 0  }
   0x4 LB: > { %s456_s18 = sadd.s32 4294967295, %s655_s17   ;;  %s25_s19 = sadd.s32 1, %s651_s16  ;;  %s655_s17 = sphi %s693_s17, %s16_s17   ;;  %s651_s16 = sphi %s691_s16, %s828_s16   ;;  %s647_s15 = sphi %s689_s15, %s827_s15   ;;  %s643_s14 = sphi %s687_s14, %s826_s14   ;;  %s639_s13 = sphi %s685_s13, %s825_s13   ;;  %s635_s12 = sphi %s683_s12, %s824_s12  }
   0x5   : > { %p26_p0 = scmp.ge.s32.totalorder %s25_s19, 4  ;;  %s63_s20 = sadd.s32 1, %s643_s14 }
   0x6   : > { %p70_p1 = scmp.ne.s32.totalorder %s643_s14, %s639_s13  ;;  %p71_p2 = scmp.eq.s32.totalorder %s655_s17, 0 }
   0x7   : > { %s830_s19 = smov (%p26_p0, %s25_s19), 0  ;;  %p76_p4 = scmp.ne.s32.totalorder %s639_s13, %s635_s12 }
   0x8   : > { %p719_p3 = por %p71_p2, %p70_p1  ;;  %s58_s22 = ssub.s32 %s651_s16, %s830_s19 }
   0x9   : > { %p77_p5 = scmp.eq.s32.totalorder %s456_s18, 0  ;;  %p61_p6 = scmp.eq.s32.totalorder %s58_s22, 0 }
   0xa   : > { %p515_p8 = scmp.lt.s32.totalorder %s655_s17, 4  ;;  %s164_s25 = sand.u32 1, %s643_s14  }
   0xb   : > { %p726_p7 = por %p77_p5, %p76_p4  ;;  %s479_s26 = sshll.u32 %s651_s16, 10 }
   0xc   : > { %s732_s24 = scalar_select %p61_p6, %s643_s14, %s63_s20  }
   0xd   : > { %s460_s27 = sshll.u32 %s164_s25, 6  ;;  %s175_s30 = scalar_lea.hbm %s818_s1, %s479_s26 }
   0xe   : > { %s168_s4 = scalar_lea.vmem [#allocation2], %s460_s27  ;;  %p741_p9 = pnand %p515_p8, %p719_p3 }
   0xf   : > { %s176_s5 = sshll.u32 %s168_s4, 4  ;;  %s165_s7 = scalar_lea.sflag [#allocation3], %s164_s25  ;;  %s177_s5 = int_to_ptr.vmem [resolvable:$true] %s176_s5 }
  0x10   : > { %p579_p10 = pneg %p741_p9  ;;  %s590_s8 = scalar_lea.vmem %s177_s5, 1024 }
  0x11   : > { %p591_p11 = scmp.ne.s32.totalorder %s177_s5, %s590_s8  ;;  %s657_s9 = smov [#allocation2]  }
  0x12   : > { %s595_s10 = sshll.u32 %s657_s9, 4  ;;  %s596_s10 = int_to_ptr.vmem [resolvable:$false] %s595_s10 }
  0x13   : > { %p593_p12 = pnand %p591_p11, %p579_p10  ;;  %s597_s11 = scalar_lea.vmem %s596_s10, 2048 }
  0x14   : > { %p598_p0 = scmp.lt.s32.totalorder %s177_s5, %s596_s10  ;;  %p599_p1 = scmp.lt.s32.totalorder %s597_s11, %s590_s8 }
  0x15   : > { %p594_p13 = pneg %p593_p12 }
  0x16   : > { %p600_p2 = por %p599_p1, %p598_p0 }
  0x18   : > { %p601_p3 = pnand %p600_p2, %p594_p13 }
  0x1a   : > { %604 = shalt.err (!%p601_p3)
}
  0x1b   : > { %s658_s12 = smov 64   ;;  %s659_s18 = smov 4  }
  0x1c   : > { %514 = dma.hbm_to_vmem [thread:$0]  (!%p741_p9), %s175_s30, 1024, %s177_s5, %s165_s7, %s658_s12, %s658_s12, %s659_s18  }
  0x1d   : > { %p463_p4 = scmp.ge.s32.totalorder %s655_s17, 1  ;;  %p184_p5 = scmp.lt.s32.totalorder %s655_s17, 5 }
  0x1f   : > { %p185_p6 = pnand %p463_p4, %p184_p5 }
  0x20   : > { %s190_s20 = sand.u32 (!%p185_p6), 1, %s639_s13  }
  0x21   : > { %188 = sbr.rel (%p185_p6) target bundleno = 288 (0x120), region = 32  ;;  %s464_s21 = sshll.u32 (!%p185_p6), %s190_s20, 6 }
  0x22   : > { %s191_s22 = scalar_lea.sflag (!%p185_p6), [#allocation3], %s190_s20  ;;  %s752_s25 = scalar_lea.vmem (!%p185_p6), [#allocation2], %s464_s21 }
  0x26   : > { %630 = dma.done.wait (%p726_p7), %s191_s22, 1024  }
  0x27   : > { %632 = vsyncadd (%p726_p7), %s191_s22, 4294966272  ;;  %p222_p8 = scmp.lt.s32.totalorder %s647_s15, 3  ;;  %p465_p9 = scmp.ne.s32.totalorder %s647_s15, 0 }
  0x29   : > { %s760_s26 = scalar_select %p222_p8, %s647_s15, 3 }
  0x2a   : > { %237 = sbr.rel (%p465_p9) target bundleno = 49 (0x31), region = 40 }
  0x2b   : > { %s224_s29 = scalar_lea.vmem %s817_s0, %s760_s26 }
  0x2f   : > { %vm238_vm0 = vcmask 517120   ;;  %v660_v0 = vmov 0.0  }
  0x30   : > { %239 = vst.msk [vmem:[%s820_s3] sm:$0x3] %vm238_vm0, %v660_v0 }
  0x31 PF: > { %v569_v1 = vld [vmem:[%s752_s25 + $0x38] sm:$0xff]   ;;  %v661_v2 = vmov 0.0   ;;  %v570_v3 = vld [vmem:[%s752_s25 + $0x30] sm:$0xff]   ;;  %vm662_vm1 = vmmov 0   ;;  %v571_v4 = vld [vmem:[%s752_s25 + $0x28] sm:$0xff]   ;;  %vm347_vm2 = vcmask 517120  }
  0x32   : > { %489 = vmatprep.subr.bf16.mxu0 %v661_v2  ;;  %505 = vmatprep.mubr.msk.bf16.mxu0 %vm662_vm1, %v661_v2  ;;  %v572_v5 = vld [vmem:[%s752_s25 + $0x20] sm:$0xff]   ;;  %v573_v6 = vld [vmem:[%s752_s25 + $0x18] sm:$0xff]   ;;  %v574_v7 = vld [vmem:[%s752_s25 + $0x10] sm:$0xff]   ;;  %p474_p7 = scmp.ne.s32.totalorder %s647_s15, 3 }
  0x33   : > { %490 = vmatpush3.bf16.msra.mxu0 %v569_v1  ;;  %v575_v8 = vld [vmem:[%s752_s25 + $0x8] sm:$0xff]   ;;  %v576_v9 = vld [vmem:[%s752_s25] sm:$0xff]  }
  0x34   : > { %491 = vmatprep.subr.bf16.mxu0 %v661_v2  ;;  %v241_v10 = vld [vmem:[%s224_s29] sm:$0x1] }
  0x37   : > { %492 = vmatpush3.bf16.msra.mxu0 %v570_v3  ;;  %v240_v11 = vld [vmem:[%s820_s3] sm:$0x3] }
  0x38   : > { %493 = vmatprep.subr.bf16.mxu0 %v661_v2 }
  0x3b   : > { %494 = vmatpush3.bf16.msra.mxu0 %v571_v4 }
  0x3c   : > { %495 = vmatprep.subr.bf16.mxu0 %v661_v2 }
  0x3f   : > { %496 = vmatpush3.bf16.msra.mxu0 %v572_v5 }
  0x40   : > { %497 = vmatprep.subr.bf16.mxu0 %v661_v2 }
  0x43   : > { %498 = vmatpush3.bf16.msra.mxu0 %v573_v6 }
  0x44   : > { %499 = vmatprep.subr.bf16.mxu0 %v661_v2 }
  0x47   : > { %500 = vmatpush3.bf16.msra.mxu0 %v574_v7 }
  0x48   : > { %501 = vmatprep.subr.bf16.mxu0 %v661_v2 }
  0x4b   : > { %502 = vmatpush3.bf16.msra.mxu0 %v575_v8 }
  0x4c   : > { %503 = vmatprep.subr.bf16.mxu0 %v661_v2 }
  0x4f   : > { %504 = vmatpush3.bf16.msra.mxu0 %v576_v9 }
  0x52   : > { %506 = vmatmul.mubr.bf16.vlgmr.msra.gmra.mxu0 %v241_v10 }
 0x112   : > { %v340_v12 = vpop.f32.mrf.mxu0 }
 0x113   : > { %v346_v13 = vadd.f32 %v340_v12, %v240_v11 }
 0x114   : > { %v507_v14 = vpop.f32.mrf.mxu0  ;;  %352 = sbr.rel (%p474_p7) target bundleno = 288 (0x120), region = 44 }
 0x115   : > { %348 = vst.msk [vmem:[%s820_s3] sm:$0x3] %vm347_vm2, %v346_v13 }
 0x116   : > { %v343_v15 = vpop.f32.mrf.mxu0 }
 0x118   : > { %v508_v16 = vpop.f32.mrf.mxu0 }
 0x119   : > { %v475_v18 = vld [vmem:[%s819_s2] ss:$0 sm:$0xff] }
 0x11c   : > { %v353_v17 = vld [vmem:[%s820_s3] sm:$0x3] }
 0x11d   : > { %v361_v19 = vadd.f32 %v475_v18, %v353_v17 }
 0x11f   : > { %362 = vst.msk [vmem:[%s820_s3] sm:$0x3] %vm347_vm2, %v361_v19 }
 0x120 PF: > { %s16_s17 = sadd.s32 1, %s655_s17   ;;  %s824_s12 = smov %s639_s13 }
 0x121   : > { %p13_p10 = scmp.ge.s32.totalorder %s16_s17, 6   ;;  %s825_s13 = smov %s643_s14 }
 0x122   : > { %s826_s14 = smov %s732_s24  ;;  %s827_s15 = smov %s651_s16 }
 0x123   : > { %s828_s16 = smov %s830_s19  ;;  %15 = sbr.rel (!%p13_p10) target bundleno = 4 (0x4), region = 86 }
 0x128   :  { %382 = vsyncpa [#allocation3], 1 }
 0x129   :  { %384 = vsyncpa [#allocation3 + $0x1], 1 }

</bundles_post_ra>
